<compile_context>
chip_gen: v6e
topology: v6e:2x2x1
jax: 0.10.0
libtpu: 0.0.40
codegen_flags: <defaults>
</compile_context>

<pallas_src>
import jax
import jax.numpy as jnp
from jax.experimental import pallas as pl
from jax.experimental.pallas import tpu as pltpu


def _round_up(n, m):
    return ((n + m - 1) // m) * m


def _resblock_kernel(x_ref, w1_ref, b1_ref, w2_ref, b2_ref, o_ref):
    x = x_ref[...]                                   # (TB, D), input dtype
    x_mxu = x.astype(w1_ref.dtype)                   # feed MXU in weight dtype (bf16-friendly)

    # linear1 + ReLU (f32 accumulation on the MXU)
    h = jnp.dot(x_mxu, w1_ref[...], preferred_element_type=jnp.float32)
    h = h + b1_ref[...].astype(jnp.float32)
    h = jnp.maximum(h, 0.0)

    # dropout (eval mode) -> identity

    # linear2
    y = jnp.dot(h.astype(w2_ref.dtype), w2_ref[...], preferred_element_type=jnp.float32)
    y = y + b2_ref[...].astype(jnp.float32)

    # residual add + ReLU, all in f32, cast once on store
    y = y + x.astype(jnp.float32)
    o_ref[...] = jnp.maximum(y, 0.0).astype(o_ref.dtype)


def _vmem_cap_bytes():
    """Per-core VMEM budget with headroom (generation-aware when queryable)."""
    cap = 64 << 20                                   # safe on v5e/v6e/v7x if query unavailable
    try:
        info = pltpu.get_tpu_info()
        cap = int(info.vmem_capacity_bytes) - (16 << 20)   # leave headroom for compiler scratch
    except Exception:
        pass
    return max(cap, 32 << 20)


def residual_block(x, w1, b1, w2, b2, *, block_b=None):
    """x: (B, D); w1, w2: (D, D) stored as (in, out); b1, b2: (1, D)."""
    B, D = x.shape
    itemsize = x.dtype.itemsize
    weight_bytes = (w1.size * w1.dtype.itemsize + w2.size * w2.dtype.itemsize
                    + b1.size * b1.dtype.itemsize + b2.size * b2.dtype.itemsize)
    cap = _vmem_cap_bytes()

    # ---- batch-tile selection --------------------------------------------------------------
    if block_b is None:
        if B <= 256:
            block_b = B                              # single full-dim block (always legal)
        else:
            # >= 2 programs (both v7x TensorCores), MXU-height-aligned 256-row tiles, cap 512.
            block_b = min(512, _round_up(pl.cdiv(B, 2), 256))
    else:
        block_b = min(int(block_b), B)
        if block_b != B:
            block_b = max(8, (block_b // 8) * 8)     # sublane-aligned tile

    def _vmem_need(tb):
        # resident weights (single-buffered) + double-buffered x/out tiles + slack
        return weight_bytes + 2 * 2 * tb * D * itemsize + (4 << 20)

    # Shrink batch tile (keeping 8-row alignment) if we would blow the per-core VMEM budget.
    while block_b > 8 and _vmem_need(block_b) > cap:
        block_b = max(8, ((block_b // 2) // 8) * 8)

    grid = (pl.cdiv(B, block_b),)
    vmem_limit = int(min(max(_vmem_need(block_b), 32 << 20), cap))

    cost = pl.CostEstimate(
        flops=4 * B * D * D,                                      # two DxD matmuls per row
        bytes_accessed=2 * B * D * itemsize + weight_bytes,
        transcendentals=0,
    )

    x_spec = pl.BlockSpec((block_b, D), lambda i: (i, 0))
    out_spec = pl.BlockSpec((block_b, D), lambda i: (i, 0))

    def _weight_specs(single_buffered):
        if single_buffered and hasattr(pl, "Buffered"):
            try:
                w_spec = pl.BlockSpec((D, D), lambda i: (0, 0), pipeline_mode=pl.Buffered(1))
                b_spec = pl.BlockSpec((1, D), lambda i: (0, 0), pipeline_mode=pl.Buffered(1))
                return w_spec, b_spec
            except TypeError:
                pass
        return (pl.BlockSpec((D, D), lambda i: (0, 0)),
                pl.BlockSpec((1, D), lambda i: (0, 0)))

    def _run(single_buffered):
        w_spec, b_spec = _weight_specs(single_buffered)
        return pl.pallas_call(
            _resblock_kernel,
            out_shape=jax.ShapeDtypeStruct((B, D), x.dtype),
            grid=grid,
            in_specs=[x_spec, w_spec, b_spec, w_spec, b_spec],
            out_specs=out_spec,
            compiler_params=pltpu.CompilerParams(
                dimension_semantics=("parallel",),
                vmem_limit_bytes=vmem_limit,
            ),
            cost_estimate=cost,
        )(x, w1, b1, w2, b2)

    try:
        return _run(True)
    except Exception:
        # Fall back to default (double-buffered) weight specs if single-buffering is unsupported.
        return _run(False)


def init_params(key, input_size, dtype=jnp.float32):
    """Deterministic init mimicking nn.Linear's uniform(-1/sqrt(fan_in), 1/sqrt(fan_in)).

    Weights are stored transposed relative to PyTorch ((in, out) instead of (out, in)).
    Fast path: dtype=jnp.bfloat16 (halves weight HBM traffic, full-rate MXU on v5e/v6e/v7x);
    the kernel keeps f32 accumulation either way.
    """
    k1, k2, k3, k4 = jax.random.split(key, 4)
    bound = 1.0 / (input_size ** 0.5)
    w1 = jax.random.uniform(k1, (input_size, input_size), dtype, -bound, bound)
    b1 = jax.random.uniform(k2, (1, input_size), dtype, -bound, bound)
    w2 = jax.random.uniform(k3, (input_size, input_size), dtype, -bound, bound)
    b2 = jax.random.uniform(k4, (1, input_size), dtype, -bound, bound)
    return w1, b1, w2, b2


def reference(x, w1, b1, w2, b2):
    f32 = jnp.float32
    hp = jax.lax.Precision.HIGHEST
    h = jnp.maximum(
        jnp.dot(x.astype(f32), w1.astype(f32), precision=hp) + b1.astype(f32), 0.0)
    y = jnp.dot(h, w2.astype(f32), precision=hp) + b2.astype(f32) + x.astype(f32)
    return jnp.maximum(y, 0.0)


if __name__ == "__main__":
    key = jax.random.PRNGKey(0)
    kx, kx2, kp = jax.random.split(key, 3)

    batch, input_size = 4, 32
    x = jax.random.normal(kx, (batch, input_size), jnp.float32)
    w1, b1, w2, b2 = init_params(kp, input_size)

    out = jax.block_until_ready(residual_block(x, w1, b1, w2, b2))
    ref = reference(x, w1, b1, w2, b2)
    assert out.shape == (batch, input_size)
    assert jnp.allclose(out, ref, atol=5e-3, rtol=5e-3), "mismatch vs reference (single tile)"

    # Multi-tile path with a ragged last block (no host-side padding): grid = cdiv(20, 8) = 3.
    batch2 = 20
    x2 = jax.random.normal(kx2, (batch2, input_size), jnp.float32)
    out2 = jax.block_until_ready(residual_block(x2, w1, b1, w2, b2, block_b=8))
    ref2 = reference(x2, w1, b1, w2, b2)
    assert out2.shape == (batch2, input_size)
    assert jnp.allclose(out2, ref2, atol=5e-3, rtol=5e-3), "mismatch vs reference (ragged tiles)"

    print("KERNEL_OK")
</pallas_src>

<mosaic_0001>
module attributes {stable_mosaic.version = 11 : i64} {
  func.func @_resblock_kernel(%arg0: i32, %arg1: memref<4x32xf32, #tpu.memory_space<vmem>>, %arg2: memref<32x32xf32, #tpu.memory_space<vmem>>, %arg3: memref<1x32xf32, #tpu.memory_space<vmem>>, %arg4: memref<32x32xf32, #tpu.memory_space<vmem>>, %arg5: memref<1x32xf32, #tpu.memory_space<vmem>>, %arg6: memref<4x32xf32, #tpu.memory_space<vmem>>) attributes {dimension_semantics = [#tpu.dimension_semantics<parallel>], iteration_bounds = array<i64: 1>, scalar_prefetch = 0 : i64, scratch_operands = 0 : i64, tpu.core_type = #tpu.core_type<tc>, window_params = [{transform_indices = @transform_0, window_bounds = array<i64: 4, 32>}, {pipeline_mode = #tpu.pipeline_mode<synchronous>, transform_indices = @transform_1, window_bounds = array<i64: 32, 32>}, {pipeline_mode = #tpu.pipeline_mode<synchronous>, transform_indices = @transform_2, window_bounds = array<i64: 1, 32>}, {pipeline_mode = #tpu.pipeline_mode<synchronous>, transform_indices = @transform_3, window_bounds = array<i64: 32, 32>}, {pipeline_mode = #tpu.pipeline_mode<synchronous>, transform_indices = @transform_4, window_bounds = array<i64: 1, 32>}, {transform_indices = @transform_5, window_bounds = array<i64: 4, 32>}]} {
    %c0 = arith.constant 0 : index
    %c0_0 = arith.constant 0 : index
    %0 = vector.load %arg1[%c0, %c0_0] : memref<4x32xf32, #tpu.memory_space<vmem>>, vector<4x32xf32>
    %c0_1 = arith.constant 0 : index
    %c0_2 = arith.constant 0 : index
    %1 = vector.load %arg2[%c0_1, %c0_2] : memref<32x32xf32, #tpu.memory_space<vmem>>, vector<32x32xf32>
    %cst = arith.constant dense<0.000000e+00> : vector<4x32xf32>
    %2 = tpu.matmul %0, %1, %cst {dimension_numbers = #tpu.dot_dimension_numbers<[1], [0], [0], [1], [0, 0, 1, 1], [], []>} : vector<4x32xf32>, vector<32x32xf32>, vector<4x32xf32> -> vector<4x32xf32>
    %c0_3 = arith.constant 0 : index
    %c0_4 = arith.constant 0 : index
    %3 = vector.load %arg3[%c0_3, %c0_4] : memref<1x32xf32, #tpu.memory_space<vmem>>, vector<1x32xf32>
    %4 = vector.broadcast %3 : vector<1x32xf32> to vector<4x32xf32>
    %5 = arith.addf %2, %4 : vector<4x32xf32>
    %cst_5 = arith.constant 0.000000e+00 : f32
    %6 = vector.broadcast %cst_5 : f32 to vector<4x32xf32>
    %7 = arith.maximumf %5, %6 : vector<4x32xf32>
    %c0_6 = arith.constant 0 : index
    %c0_7 = arith.constant 0 : index
    %8 = vector.load %arg4[%c0_6, %c0_7] : memref<32x32xf32, #tpu.memory_space<vmem>>, vector<32x32xf32>
    %cst_8 = arith.constant dense<0.000000e+00> : vector<4x32xf32>
    %9 = tpu.matmul %7, %8, %cst_8 {dimension_numbers = #tpu.dot_dimension_numbers<[1], [0], [0], [1], [0, 0, 1, 1], [], []>} : vector<4x32xf32>, vector<32x32xf32>, vector<4x32xf32> -> vector<4x32xf32>
    %c0_9 = arith.constant 0 : index
    %c0_10 = arith.constant 0 : index
    %10 = vector.load %arg5[%c0_9, %c0_10] : memref<1x32xf32, #tpu.memory_space<vmem>>, vector<1x32xf32>
    %11 = vector.broadcast %10 : vector<1x32xf32> to vector<4x32xf32>
    %12 = arith.addf %9, %11 : vector<4x32xf32>
    %13 = arith.addf %12, %0 : vector<4x32xf32>
    %cst_11 = arith.constant 0.000000e+00 : f32
    %14 = vector.broadcast %cst_11 : f32 to vector<4x32xf32>
    %15 = arith.maximumf %13, %14 : vector<4x32xf32>
    %c0_12 = arith.constant 0 : index
    %c0_13 = arith.constant 0 : index
    %16 = vector.load %arg6[%c0_12, %c0_13] : memref<4x32xf32, #tpu.memory_space<vmem>>, vector<4x32xf32>
    tpu.vector_store %arg6[%c0_12, %c0_13], %15 {strides = array<i32>} : memref<4x32xf32, #tpu.memory_space<vmem>>, vector<4x32xf32>,
    return
  }
  func.func @transform_0(%arg0: i32) -> (i32, i32) {
    %c0_i32 = arith.constant 0 : i32
    %c0_i32_0 = arith.constant 0 : i32
    return %arg0, %c0_i32 : i32, i32
  }
  func.func @transform_1(%arg0: i32) -> (i32, i32) {
    %c0_i32 = arith.constant 0 : i32
    %c0_i32_0 = arith.constant 0 : i32
    %c0_i32_1 = arith.constant 0 : i32
    return %c0_i32, %c0_i32_0 : i32, i32
  }
  func.func @transform_2(%arg0: i32) -> (i32, i32) {
    %c0_i32 = arith.constant 0 : i32
    %c0_i32_0 = arith.constant 0 : i32
    %c0_i32_1 = arith.constant 0 : i32
    return %c0_i32, %c0_i32_0 : i32, i32
  }
  func.func @transform_3(%arg0: i32) -> (i32, i32) {
    %c0_i32 = arith.constant 0 : i32
    %c0_i32_0 = arith.constant 0 : i32
    %c0_i32_1 = arith.constant 0 : i32
    return %c0_i32, %c0_i32_0 : i32, i32
  }
  func.func @transform_4(%arg0: i32) -> (i32, i32) {
    %c0_i32 = arith.constant 0 : i32
    %c0_i32_0 = arith.constant 0 : i32
    %c0_i32_1 = arith.constant 0 : i32
    return %c0_i32, %c0_i32_0 : i32, i32
  }
  func.func @transform_5(%arg0: i32) -> (i32, i32) {
    %c0_i32 = arith.constant 0 : i32
    %c0_i32_0 = arith.constant 0 : i32
    return %arg0, %c0_i32 : i32, i32
  }
}

module attributes {stable_mosaic.version = 11 : i64} {
  func.func @_resblock_kernel(%arg0: i32, %arg1: memref<4x32xf32, #tpu.memory_space<vmem>>, %arg2: memref<32x32xf32, #tpu.memory_space<vmem>>, %arg3: memref<1x32xf32, #tpu.memory_space<vmem>>, %arg4: memref<32x32xf32, #tpu.memory_space<vmem>>, %arg5: memref<1x32xf32, #tpu.memory_space<vmem>>, %arg6: memref<4x32xf32, #tpu.memory_space<vmem>>) attributes {dimension_semantics = [#tpu.dimension_semantics<parallel>], iteration_bounds = array<i64: 1>, scalar_prefetch = 0 : i64, scratch_operands = 0 : i64, tpu.core_type = #tpu.core_type<tc>, window_params = [{transform_indices = @transform_0, window_bounds = array<i64: 4, 32>}, {pipeline_mode = #tpu.pipeline_mode<synchronous>, transform_indices = @transform_1, window_bounds = array<i64: 32, 32>}, {pipeline_mode = #tpu.pipeline_mode<synchronous>, transform_indices = @transform_2, window_bounds = array<i64: 1, 32>}, {pipeline_mode = #tpu.pipeline_mode<synchronous>, transform_indices = @transform_3, window_bounds = array<i64: 32, 32>}, {pipeline_mode = #tpu.pipeline_mode<synchronous>, transform_indices = @transform_4, window_bounds = array<i64: 1, 32>}, {transform_indices = @transform_5, window_bounds = array<i64: 4, 32>}]} {
    %c0 = arith.constant 0 : index
    %c0_0 = arith.constant 0 : index
    %0 = vector.load %arg1[%c0, %c0_0] : memref<4x32xf32, #tpu.memory_space<vmem>>, vector<4x32xf32>
    %c0_1 = arith.constant 0 : index
    %c0_2 = arith.constant 0 : index
    %1 = vector.load %arg2[%c0_1, %c0_2] : memref<32x32xf32, #tpu.memory_space<vmem>>, vector<32x32xf32>
    %cst = arith.constant dense<0.000000e+00> : vector<4x32xf32>
    %2 = tpu.matmul %0, %1, %cst {dimension_numbers = #tpu.dot_dimension_numbers<[1], [0], [0], [1], [0, 0, 1, 1], [], []>} : vector<4x32xf32>, vector<32x32xf32>, vector<4x32xf32> -> vector<4x32xf32>
    %c0_3 = arith.constant 0 : index
    %c0_4 = arith.constant 0 : index
    %3 = vector.load %arg3[%c0_3, %c0_4] : memref<1x32xf32, #tpu.memory_space<vmem>>, vector<1x32xf32>
    %4 = vector.broadcast %3 : vector<1x32xf32> to vector<4x32xf32>
    %5 = arith.addf %2, %4 : vector<4x32xf32>
    %cst_5 = arith.constant 0.000000e+00 : f32
    %6 = vector.broadcast %cst_5 : f32 to vector<4x32xf32>
    %7 = arith.maximumf %5, %6 : vector<4x32xf32>
    %c0_6 = arith.constant 0 : index
    %c0_7 = arith.constant 0 : index
    %8 = vector.load %arg4[%c0_6, %c0_7] : memref<32x32xf32, #tpu.memory_space<vmem>>, vector<32x32xf32>
    %cst_8 = arith.constant dense<0.000000e+00> : vector<4x32xf32>
    %9 = tpu.matmul %7, %8, %cst_8 {dimension_numbers = #tpu.dot_dimension_numbers<[1], [0], [0], [1], [0, 0, 1, 1], [], []>} : vector<4x32xf32>, vector<32x32xf32>, vector<4x32xf32> -> vector<4x32xf32>
    %c0_9 = arith.constant 0 : index
    %c0_10 = arith.constant 0 : index
    %10 = vector.load %arg5[%c0_9, %c0_10] : memref<1x32xf32, #tpu.memory_space<vmem>>, vector<1x32xf32>
    %11 = vector.broadcast %10 : vector<1x32xf32> to vector<4x32xf32>
    %12 = arith.addf %9, %11 : vector<4x32xf32>
    %13 = arith.addf %12, %0 : vector<4x32xf32>
    %cst_11 = arith.constant 0.000000e+00 : f32
    %14 = vector.broadcast %cst_11 : f32 to vector<4x32xf32>
    %15 = arith.maximumf %13, %14 : vector<4x32xf32>
    %c0_12 = arith.constant 0 : index
    %c0_13 = arith.constant 0 : index
    %16 = vector.load %arg6[%c0_12, %c0_13] : memref<4x32xf32, #tpu.memory_space<vmem>>, vector<4x32xf32>
    tpu.vector_store %arg6[%c0_12, %c0_13], %15 {strides = array<i32>} : memref<4x32xf32, #tpu.memory_space<vmem>>, vector<4x32xf32>,
    return
  }
  func.func @transform_0(%arg0: i32) -> (i32, i32) {
    %c0_i32 = arith.constant 0 : i32
    %c0_i32_0 = arith.constant 0 : i32
    return %arg0, %c0_i32 : i32, i32
  }
  func.func @transform_1(%arg0: i32) -> (i32, i32) {
    %c0_i32 = arith.constant 0 : i32
    %c0_i32_0 = arith.constant 0 : i32
    %c0_i32_1 = arith.constant 0 : i32
    return %c0_i32, %c0_i32_0 : i32, i32
  }
  func.func @transform_2(%arg0: i32) -> (i32, i32) {
    %c0_i32 = arith.constant 0 : i32
    %c0_i32_0 = arith.constant 0 : i32
    %c0_i32_1 = arith.constant 0 : i32
    return %c0_i32, %c0_i32_0 : i32, i32
  }
  func.func @transform_3(%arg0: i32) -> (i32, i32) {
    %c0_i32 = arith.constant 0 : i32
    %c0_i32_0 = arith.constant 0 : i32
    %c0_i32_1 = arith.constant 0 : i32
    return %c0_i32, %c0_i32_0 : i32, i32
  }
  func.func @transform_4(%arg0: i32) -> (i32, i32) {
    %c0_i32 = arith.constant 0 : i32
    %c0_i32_0 = arith.constant 0 : i32
    %c0_i32_1 = arith.constant 0 : i32
    return %c0_i32, %c0_i32_0 : i32, i32
  }
  func.func @transform_5(%arg0: i32) -> (i32, i32) {
    %c0_i32 = arith.constant 0 : i32
    %c0_i32_0 = arith.constant 0 : i32
    return %arg0, %c0_i32 : i32, i32
  }
}

</mosaic_0001>

<bundles_post_ra>
// kernel: tpu_custom_call.1
= control target key start
LH: loop header
LB: loop body
LE: loop exit
PB: predicated region body
PF: predicated region fallthrough
CT: control target
= control target key end

     0   :  { %10 = vsyncpa [#allocation3], 0  ;;  %s439_s0 = inlined_call_operand.hbm [shape: f32[4,32], index: 0, kind: input, shape index: {}]   ;;  %s440_s1 = inlined_call_operand.hbm [shape: f32[32,32], index: 1, kind: input, shape index: {}]   ;;  %s441_s2 = inlined_call_operand.vmem [shape: f32[1,32], index: 2, kind: input, shape index: {}]   ;;  %s442_s3 = inlined_call_operand.hbm [shape: f32[32,32], index: 3, kind: input, shape index: {}]   ;;  %s443_s4 = inlined_call_operand.vmem [shape: f32[1,32], index: 4, kind: input, shape index: {}]   ;;  %s444_s5 = inlined_call_operand.hbm [shape: f32[4,32], index: 5, kind: output, shape index: {}]  }
   0x1   :  { %11 = vsyncpa [#allocation6], 0 }
   0x2   :  { %12 = vsyncpa [#allocation4], 0  ;;  %s381_s18 = smov [#allocation5]  }
   0x3   :  { %s28_s19 = sshll.u32 %s381_s18, 4  ;;  %s29_s19 = int_to_ptr.vmem [resolvable:$true] %s28_s19 }
   0x4   :  { %s303_s20 = scalar_lea.vmem %s29_s19, 512  ;;  %p308_p1 = scmp.lt.s32.totalorder %s29_s19, %s29_s19 }
   0x5   :  { %p304_p0 = scmp.ne.s32.totalorder %s29_s19, %s303_s20  ;;  %p309_p2 = scmp.lt.s32.totalorder %s303_s20, %s303_s20 }
   0x7   :  { %p310_p3 = por %p309_p2, %p308_p1 }
   0x9   :  { %p311_p4 = pnand %p310_p3, %p304_p0 }
   0xb   :  { %314 = shalt.err (!%p311_p4)
}
   0xc   :  { %s382_s21 = smov 128   ;;  %s383_s22 = smov 8  }
   0xd   :  { %34 = dma.hbm_to_vmem [thread:$0]  %s440_s1, 512, %s29_s19, [#allocation6], %s382_s21, %s382_s21, %s383_s22  }
   0xe   :  { %s384_s25 = smov [#allocation2]   ;;  %s385_s27 = smov [#allocation7]  }
   0xf   :  { %s19_s26 = sshll.u32 %s384_s25, 4  ;;  %s42_s28 = sshll.u32 %s385_s27, 4  ;;  %s20_s26 = int_to_ptr.vmem [resolvable:$true] %s19_s26  ;;  %s43_s28 = int_to_ptr.vmem [resolvable:$true] %s42_s28 }
  0x10   :  { %s323_s29 = scalar_lea.vmem %s20_s26, 64  ;;  %p328_p6 = scmp.lt.s32.totalorder %s20_s26, %s20_s26 }
  0x11   :  { %p324_p5 = scmp.ne.s32.totalorder %s20_s26, %s323_s29  ;;  %p329_p7 = scmp.lt.s32.totalorder %s323_s29, %s323_s29 }
  0x13   :  { %p330_p8 = por %p329_p7, %p328_p6 }
  0x15   :  { %p331_p9 = pnand %p330_p8, %p324_p5 }
  0x17   :  { %334 = shalt.err (!%p331_p9)
}
  0x18   :  { %22 = dma.hbm_to_vmem [thread:$0]  %s439_s0, 64, %s20_s26, [#allocation3]  }
  0x19   :  { %s343_s7 = scalar_lea.vmem %s43_s28, 512  ;;  %p348_p11 = scmp.lt.s32.totalorder %s43_s28, %s43_s28 }
  0x1a   :  { %p344_p10 = scmp.ne.s32.totalorder %s43_s28, %s343_s7  ;;  %p349_p12 = scmp.lt.s32.totalorder %s343_s7, %s343_s7 }
  0x1c   :  { %p350_p13 = por %p349_p12, %p348_p11 }
  0x1e   :  { %p351_p0 = pnand %p350_p13, %p344_p10 }
  0x20   :  { %354 = shalt.err (!%p351_p0)
}
  0x21   :  { %48 = dma.hbm_to_vmem [thread:$0]  %s442_s3, 512, %s43_s28, [#allocation6], %s382_s21, %s382_s21, %s383_s22  }
  0x22   :  { %375 = dma.done.wait [#allocation3], 64  }
  0x23   :  { %376 = vsyncadd [#allocation3], 4294967232 }
  0x24   :  { %377 = dma.done.wait [#allocation6], 1024  }
  0x25   :  { %378 = vsyncadd [#allocation6], 4294966272  ;;  %v386_v0 = vmov 0.0   ;;  %vm387_vm0 = vmmov 0   ;;  %v64_v1 = vld [vmem:[#allocation5 + $0x18] sm:$0xff]  ;;  %v63_v2 = vld [vmem:[#allocation5 + $0x10] sm:$0xff] }
  0x26   :  { %265 = vmatprep.subr.mxu0 %v386_v0  ;;  %273 = vmatprep.mubr.msk.f32.mxu0 %vm387_vm0, %v386_v0  ;;  %v150_v3 = vld [vmem:[#allocation7 + $0x18] sm:$0xff]  ;;  %v62_v4 = vld [vmem:[#allocation5 + $0x8] sm:$0xff]  ;;  %v61_v5 = vld [vmem:[#allocation5] sm:$0xff]  ;;  %vm72_vm1 = vcmask 261120   ;;  %s388_s11 = smov [#allocation8]   ;;  %vm233_vm2 = vcmask 257024  }
  0x27   :  { %276 = vmatprep.subr.mxu1 %v386_v0  ;;  %284 = vmatprep.mubr.msk.f32.mxu1 %vm387_vm0, %v386_v0  ;;  %v60_v6 = vld [vmem:[#allocation2] sm:$0xf]  ;;  %v149_v7 = vld [vmem:[#allocation7 + $0x10] sm:$0xff]  ;;  %v148_v8 = vld [vmem:[#allocation7 + $0x8] sm:$0xff]  ;;  %s241_s12 = sshll.u32 %s388_s11, 4  ;;  %s242_s12 = int_to_ptr.vmem [resolvable:$true] %s241_s12 }
  0x28   :  { %266 = vmatpush3.msra.mxu0 %v64_v1  ;;  %277 = vmatpush3.msra.mxu1 %v150_v3  ;;  %v147_v9 = vld [vmem:[#allocation7] sm:$0xff]  ;;  %v251_v10 = vld [vmem:[%s441_s2] ss:$0 sm:$0xff]  ;;  %s355_s2 = scalar_lea.vmem %s242_s12, 64  ;;  %p360_p2 = scmp.lt.s32.totalorder %s242_s12, %s242_s12 }
  0x29   :  { %267 = vmatprep.subr.mxu0 %v386_v0  ;;  %278 = vmatprep.subr.mxu1 %v386_v0  ;;  %v253_v15 = vld [vmem:[%s443_s4] ss:$0 sm:$0xff]  ;;  %p356_p1 = scmp.ne.s32.totalorder %s242_s12, %s355_s2  ;;  %p361_p3 = scmp.lt.s32.totalorder %s355_s2, %s355_s2 }
  0x2a   :  { %268 = vmatpush3.msra.mxu0 %v63_v2  ;;  %279 = vmatpush3.msra.mxu1 %v149_v7 }
  0x2b   :  { %269 = vmatprep.subr.mxu0 %v386_v0  ;;  %280 = vmatprep.subr.mxu1 %v386_v0  ;;  %p362_p4 = por %p361_p3, %p360_p2 }
  0x2c   :  { %270 = vmatpush3.msra.mxu0 %v62_v4  ;;  %281 = vmatpush3.msra.mxu1 %v148_v8 }
  0x2d   :  { %271 = vmatprep.subr.mxu0 %v386_v0  ;;  %282 = vmatprep.subr.mxu1 %v386_v0  ;;  %p363_p5 = pnand %p362_p4, %p356_p1 }
  0x2e   :  { %272 = vmatpush3.msra.mxu0 %v61_v5  ;;  %283 = vmatpush3.msra.mxu1 %v147_v9 }
  0x2f   :  { %274 = vmatmul.mubr.msk.f32.vlgmr.msra.gmra.mxu0 %vm72_vm1, %v60_v6 }
  0xef   :  { %v142_v11 = vpop.f32.mrf.mxu0 }
  0xf0   :  { %v143_v12 = vadd.f32 %v251_v10, %v142_v11 }
  0xf1   :  { %v275_v13 = vpop.f32.mrf.mxu0 }
  0xf2   :  { %v146_v14 = vmax.f32 %v143_v12, 0.0 }
  0xf4   :  { %285 = vmatmul.mubr.msk.f32.vlgmr.msra.gmra.mxu1 %vm72_vm1, %v146_v14 }
 0x1b4   :  { %v227_v16 = vpop.f32.mrf.mxu1 }
 0x1b5   :  { %v228_v17 = vadd.f32 %v253_v15, %v227_v16 }
 0x1b6   :  { %v286_v18 = vpop.f32.mrf.mxu1 }
 0x1b7   :  { %v231_v19 = vadd.f32 %v228_v17, %v60_v6 }
 0x1b9   :  { %v232_v20 = vmax.f32 %v231_v19, 0.0 }
 0x1bb   :  { %234 = vst.msk [vmem:[#allocation8] sm:$0xf] %vm233_vm2, %v232_v20 }
 0x1bc   :  { %366 = shalt.err (!%p363_p5)
}
 0x1bd   :  { %244 = dma.vmem_to_hbm [thread:$0]  %s242_s12, 64, %s444_s5, [#allocation4]  }
 0x1be   :  { %379 = dma.done.wait [#allocation4], 64  }
 0x1bf   :  { %380 = vsyncadd [#allocation4], 4294967232 }
 0x1c0   :  { %248 = vsyncpa [#allocation3], 1 }
 0x1c1   :  { %249 = vsyncpa [#allocation6], 1 }
 0x1c2   :  { %250 = vsyncpa [#allocation4], 1 }

// kernel: tpu_custom_call.1
= control target key start
LH: loop header
LB: loop body
LE: loop exit
PB: predicated region body
PF: predicated region fallthrough
CT: control target
= control target key end

     0   :  { %10 = vsyncpa [#allocation3], 0  ;;  %s439_s0 = inlined_call_operand.hbm [shape: f32[4,32], index: 0, kind: input, shape index: {}]   ;;  %s440_s1 = inlined_call_operand.hbm [shape: f32[32,32], index: 1, kind: input, shape index: {}]   ;;  %s441_s2 = inlined_call_operand.vmem [shape: f32[1,32], index: 2, kind: input, shape index: {}]   ;;  %s442_s3 = inlined_call_operand.hbm [shape: f32[32,32], index: 3, kind: input, shape index: {}]   ;;  %s443_s4 = inlined_call_operand.vmem [shape: f32[1,32], index: 4, kind: input, shape index: {}]   ;;  %s444_s5 = inlined_call_operand.hbm [shape: f32[4,32], index: 5, kind: output, shape index: {}]  }
   0x1   :  { %11 = vsyncpa [#allocation6], 0 }
   0x2   :  { %12 = vsyncpa [#allocation4], 0  ;;  %s381_s18 = smov [#allocation5]  }
   0x3   :  { %s28_s19 = sshll.u32 %s381_s18, 4  ;;  %s29_s19 = int_to_ptr.vmem [resolvable:$true] %s28_s19 }
   0x4   :  { %s303_s20 = scalar_lea.vmem %s29_s19, 512  ;;  %p308_p1 = scmp.lt.s32.totalorder %s29_s19, %s29_s19 }
   0x5   :  { %p304_p0 = scmp.ne.s32.totalorder %s29_s19, %s303_s20  ;;  %p309_p2 = scmp.lt.s32.totalorder %s303_s20, %s303_s20 }
   0x7   :  { %p310_p3 = por %p309_p2, %p308_p1 }
   0x9   :  { %p311_p4 = pnand %p310_p3, %p304_p0 }
   0xb   :  { %314 = shalt.err (!%p311_p4)
}
   0xc   :  { %s382_s21 = smov 128   ;;  %s383_s22 = smov 8  }
   0xd   :  { %34 = dma.hbm_to_vmem [thread:$0]  %s440_s1, 512, %s29_s19, [#allocation6], %s382_s21, %s382_s21, %s383_s22  }
   0xe   :  { %s384_s25 = smov [#allocation2]   ;;  %s385_s27 = smov [#allocation7]  }
   0xf   :  { %s19_s26 = sshll.u32 %s384_s25, 4  ;;  %s42_s28 = sshll.u32 %s385_s27, 4  ;;  %s20_s26 = int_to_ptr.vmem [resolvable:$true] %s19_s26  ;;  %s43_s28 = int_to_ptr.vmem [resolvable:$true] %s42_s28 }
  0x10   :  { %s323_s29 = scalar_lea.vmem %s20_s26, 64  ;;  %p328_p6 = scmp.lt.s32.totalorder %s20_s26, %s20_s26 }
  0x11   :  { %p324_p5 = scmp.ne.s32.totalorder %s20_s26, %s323_s29  ;;  %p329_p7 = scmp.lt.s32.totalorder %s323_s29, %s323_s29 }
  0x13   :  { %p330_p8 = por %p329_p7, %p328_p6 }
  0x15   :  { %p331_p9 = pnand %p330_p8, %p324_p5 }
  0x17   :  { %334 = shalt.err (!%p331_p9)
}
  0x18   :  { %22 = dma.hbm_to_vmem [thread:$0]  %s439_s0, 64, %s20_s26, [#allocation3]  }
  0x19   :  { %s343_s7 = scalar_lea.vmem %s43_s28, 512  ;;  %p348_p11 = scmp.lt.s32.totalorder %s43_s28, %s43_s28 }
  0x1a   :  { %p344_p10 = scmp.ne.s32.totalorder %s43_s28, %s343_s7  ;;  %p349_p12 = scmp.lt.s32.totalorder %s343_s7, %s343_s7 }
  0x1c   :  { %p350_p13 = por %p349_p12, %p348_p11 }
  0x1e   :  { %p351_p0 = pnand %p350_p13, %p344_p10 }
  0x20   :  { %354 = shalt.err (!%p351_p0)
}
  0x21   :  { %48 = dma.hbm_to_vmem [thread:$0]  %s442_s3, 512, %s43_s28, [#allocation6], %s382_s21, %s382_s21, %s383_s22  }
  0x22   :  { %375 = dma.done.wait [#allocation3], 64  }
  0x23   :  { %376 = vsyncadd [#allocation3], 4294967232 }
  0x24   :  { %377 = dma.done.wait [#allocation6], 1024  }
  0x25   :  { %378 = vsyncadd [#allocation6], 4294966272  ;;  %v386_v0 = vmov 0.0   ;;  %vm387_vm0 = vmmov 0   ;;  %v64_v1 = vld [vmem:[#allocation5 + $0x18] sm:$0xff]  ;;  %v63_v2 = vld [vmem:[#allocation5 + $0x10] sm:$0xff] }
  0x26   :  { %265 = vmatprep.subr.mxu0 %v386_v0  ;;  %273 = vmatprep.mubr.msk.f32.mxu0 %vm387_vm0, %v386_v0  ;;  %v150_v3 = vld [vmem:[#allocation7 + $0x18] sm:$0xff]  ;;  %v62_v4 = vld [vmem:[#allocation5 + $0x8] sm:$0xff]  ;;  %v61_v5 = vld [vmem:[#allocation5] sm:$0xff]  ;;  %vm72_vm1 = vcmask 261120   ;;  %s388_s11 = smov [#allocation8]   ;;  %vm233_vm2 = vcmask 257024  }
  0x27   :  { %276 = vmatprep.subr.mxu1 %v386_v0  ;;  %284 = vmatprep.mubr.msk.f32.mxu1 %vm387_vm0, %v386_v0  ;;  %v60_v6 = vld [vmem:[#allocation2] sm:$0xf]  ;;  %v149_v7 = vld [vmem:[#allocation7 + $0x10] sm:$0xff]  ;;  %v148_v8 = vld [vmem:[#allocation7 + $0x8] sm:$0xff]  ;;  %s241_s12 = sshll.u32 %s388_s11, 4  ;;  %s242_s12 = int_to_ptr.vmem [resolvable:$true] %s241_s12 }
  0x28   :  { %266 = vmatpush3.msra.mxu0 %v64_v1  ;;  %277 = vmatpush3.msra.mxu1 %v150_v3  ;;  %v147_v9 = vld [vmem:[#allocation7] sm:$0xff]  ;;  %v251_v10 = vld [vmem:[%s441_s2] ss:$0 sm:$0xff]  ;;  %s355_s2 = scalar_lea.vmem %s242_s12, 64  ;;  %p360_p2 = scmp.lt.s32.totalorder %s242_s12, %s242_s12 }
  0x29   :  { %267 = vmatprep.subr.mxu0 %v386_v0  ;;  %278 = vmatprep.subr.mxu1 %v386_v0  ;;  %v253_v15 = vld [vmem:[%s443_s4] ss:$0 sm:$0xff]  ;;  %p356_p1 = scmp.ne.s32.totalorder %s242_s12, %s355_s2  ;;  %p361_p3 = scmp.lt.s32.totalorder %s355_s2, %s355_s2 }
  0x2a   :  { %268 = vmatpush3.msra.mxu0 %v63_v2  ;;  %279 = vmatpush3.msra.mxu1 %v149_v7 }
  0x2b   :  { %269 = vmatprep.subr.mxu0 %v386_v0  ;;  %280 = vmatprep.subr.mxu1 %v386_v0  ;;  %p362_p4 = por %p361_p3, %p360_p2 }
  0x2c   :  { %270 = vmatpush3.msra.mxu0 %v62_v4  ;;  %281 = vmatpush3.msra.mxu1 %v148_v8 }
  0x2d   :  { %271 = vmatprep.subr.mxu0 %v386_v0  ;;  %282 = vmatprep.subr.mxu1 %v386_v0  ;;  %p363_p5 = pnand %p362_p4, %p356_p1 }
  0x2e   :  { %272 = vmatpush3.msra.mxu0 %v61_v5  ;;  %283 = vmatpush3.msra.mxu1 %v147_v9 }
  0x2f   :  { %274 = vmatmul.mubr.msk.f32.vlgmr.msra.gmra.mxu0 %vm72_vm1, %v60_v6 }
  0xef   :  { %v142_v11 = vpop.f32.mrf.mxu0 }
  0xf0   :  { %v143_v12 = vadd.f32 %v251_v10, %v142_v11 }
  0xf1   :  { %v275_v13 = vpop.f32.mrf.mxu0 }
  0xf2   :  { %v146_v14 = vmax.f32 %v143_v12, 0.0 }
  0xf4   :  { %285 = vmatmul.mubr.msk.f32.vlgmr.msra.gmra.mxu1 %vm72_vm1, %v146_v14 }
 0x1b4   :  { %v227_v16 = vpop.f32.mrf.mxu1 }
 0x1b5   :  { %v228_v17 = vadd.f32 %v253_v15, %v227_v16 }
 0x1b6   :  { %v286_v18 = vpop.f32.mrf.mxu1 }
 0x1b7   :  { %v231_v19 = vadd.f32 %v228_v17, %v60_v6 }
 0x1b9   :  { %v232_v20 = vmax.f32 %v231_v19, 0.0 }
 0x1bb   :  { %234 = vst.msk [vmem:[#allocation8] sm:$0xf] %vm233_vm2, %v232_v20 }
 0x1bc   :  { %366 = shalt.err (!%p363_p5)
}
 0x1bd   :  { %244 = dma.vmem_to_hbm [thread:$0]  %s242_s12, 64, %s444_s5, [#allocation4]  }
 0x1be   :  { %379 = dma.done.wait [#allocation4], 64  }
 0x1bf   :  { %380 = vsyncadd [#allocation4], 4294967232 }
 0x1c0   :  { %248 = vsyncpa [#allocation3], 1 }
 0x1c1   :  { %249 = vsyncpa [#allocation6], 1 }
 0x1c2   :  { %250 = vsyncpa [#allocation4], 1 }

</bundles_post_ra>
